<compile_context>
chip_gen: v7x
topology: tpu7x:2x2x1
jax: 0.10.0
libtpu: 0.0.40
codegen_flags: <defaults>
</compile_context>

<pallas_src>
import functools

import jax
import jax.numpy as jnp
from jax.experimental import pallas as pl
from jax.experimental.pallas import tpu as pltpu


HP = 128  # lane-aligned padded width for hidden / output dims


def _round_up(x, m):
    return (x + m - 1) // m * m


def actor_critic_kernel(x_ref, slab_ref, bias_ref, out_ref, *, hp, sp):
    """Three lane-dense bf16 MXU matmuls (f32 accumulate + f32 epilogue).

    bf16 slab layout ([sp + 3*hp, 2*hp]):
      rows [0,   sp)        cols [0, hp)    : W_head   (padded [S, H])
      rows [sp,  sp+hp)     cols [0, 2hp)   : W1_cat   (actor hidden | critic hidden)
      rows [sp+hp, sp+3hp)  cols [0, hp)    : W2_cat   (block-diag: actor head / critic head)
    f32 bias layout ([16, 2*hp]):
      row 0  cols [0, hp)   : b_head
      row 0  cols [hp, 2hp) : b2_cat (b_a2 | b_c2)
      row 8  cols [0, 2hp)  : b1_cat (b_a1 | b_c1)
    """
    x = x_ref[...].astype(jnp.bfloat16)                    # [TB, sp]

    w_head = slab_ref[0:sp, 0:hp]                          # [sp, hp]   bf16
    w1 = slab_ref[sp:sp + hp, 0:2 * hp]                    # [hp, 2hp]  bf16
    w2 = slab_ref[sp + hp:sp + 3 * hp, 0:hp]               # [2hp, hp]  bf16

    b_head = bias_ref[0:1, 0:hp]                           # f32
    b2 = bias_ref[0:1, hp:2 * hp]
    b1 = bias_ref[8:9, 0:2 * hp]

    # head: Linear + ReLU  (f32 accumulate, f32 bias/ReLU)
    h = jnp.maximum(
        jnp.dot(x, w_head, preferred_element_type=jnp.float32) + b_head, 0.0)

    # fused actor/critic hidden layer: one matmul -> [TB, 2*hp]
    hh = jnp.maximum(
        jnp.dot(h.astype(jnp.bfloat16), w1,
                preferred_element_type=jnp.float32) + b1, 0.0)

    # fused output heads (block-diagonal): cols [0, A) = action, col A = value
    out = jnp.dot(hh.astype(jnp.bfloat16), w2,
                  preferred_element_type=jnp.float32) + b2

    out_ref[...] = out.astype(out_ref.dtype)


def _num_tensorcores():
    try:
        kind = jax.devices()[0].device_kind.lower()
    except Exception:
        return 1
    return 2 if "v7" in kind else 1


def actor_critic_forward(x, packed):
    """x: [B, state_space] float32.  Returns (action [B, A], value [B, 1])."""
    slab = packed["slab"]
    bias = packed["bias"]
    S = packed["state_space"]
    A = packed["action_space"]
    hp = packed["hp"]
    sp = packed["sp"]
    B = x.shape[0]

    # Batch tile: large (512) for big rollout batches to amortize per-step
    # overhead; on 2-TC chips (v7x) split so the grid has >= 2 iterations.
    num_tc = _num_tensorcores()
    TB_MAX = 512
    B8 = _round_up(B, 8)
    if num_tc > 1 and B8 >= 16:
        TB = min(TB_MAX, _round_up(pl.cdiv(B8, num_tc), 8))
    else:
        TB = min(TB_MAX, B8)
    B_pad = _round_up(B, TB)

    # Only pad when actually required (no 128-lane inflation of x in HBM).
    if (B_pad, sp) != (B, S):
        x_p = jnp.zeros((B_pad, sp), jnp.float32).at[:B, :S].set(
            x.astype(jnp.float32))
    else:
        x_p = x.astype(jnp.float32)

    out = pl.pallas_call(
        functools.partial(actor_critic_kernel, hp=hp, sp=sp),
        out_shape=jax.ShapeDtypeStruct((B_pad, hp), jnp.float32),
        grid_spec=pltpu.PrefetchScalarGridSpec(
            num_scalar_prefetch=0,
            grid=(B_pad // TB,),
            in_specs=[
                # x: streamed per batch tile (last dim == full array dim).
                pl.BlockSpec((TB, sp), lambda i: (i, 0)),
                # bf16 weight slab: constant index -> DMA'd once, VMEM-resident.
                pl.BlockSpec(slab.shape, lambda i: (0, 0)),
                # tiny f32 bias slab: constant index -> VMEM-resident.
                pl.BlockSpec(bias.shape, lambda i: (0, 0)),
            ],
            out_specs=pl.BlockSpec((TB, hp), lambda i: (i, 0)),
        ),
        compiler_params=pltpu.CompilerParams(
            dimension_semantics=("parallel",)),
    )(x_p, slab, bias)

    action = out[:B, :A]
    value = out[:B, A:A + 1]
    return action, value


def init_params(key, state_space, action_space, hidden_size):
    """nn.Linear-style init (uniform +/- 1/sqrt(fan_in)).
    Weights stored [in_features, out_features]; biases [1, out_features]."""
    def linear(key, fan_in, fan_out):
        kw, kb = jax.random.split(key)
        bound = 1.0 / jnp.sqrt(float(fan_in))
        w = jax.random.uniform(kw, (fan_in, fan_out), jnp.float32, -bound, bound)
        b = jax.random.uniform(kb, (1, fan_out), jnp.float32, -bound, bound)
        return w, b

    keys = jax.random.split(key, 5)
    w_head, b_head = linear(keys[0], state_space, hidden_size)
    w_a1, b_a1 = linear(keys[1], hidden_size, hidden_size)
    w_a2, b_a2 = linear(keys[2], hidden_size, action_space)
    w_c1, b_c1 = linear(keys[3], hidden_size, hidden_size)
    w_c2, b_c2 = linear(keys[4], hidden_size, 1)
    return dict(
        w_head=w_head, b_head=b_head,
        w_a1=w_a1, b_a1=b_a1, w_a2=w_a2, b_a2=b_a2,
        w_c1=w_c1, b_c1=b_c1, w_c2=w_c2, b_c2=b_c2,
    )


def pack_params(p, state_space, action_space, hidden_size, hp=HP):
    """Pack weights into one bf16, lane-aligned slab; biases into a small f32 slab."""
    S, H, A = state_space, action_space and action_space, action_space
    S, H, A = state_space, hidden_size, action_space
    assert S <= hp and H <= hp and A + 1 <= hp

    sp = _round_up(S, 16)           # bf16 sublane-pair aligned head-contraction dim
    rows = sp + 3 * hp
    cols = 2 * hp

    slab = jnp.zeros((rows, cols), jnp.float32)
    # head weight.
    slab = slab.at[0:S, 0:H].set(p["w_head"])
    # fused hidden weight: actor cols [0, H), critic cols [hp, hp+H).
    r1 = sp
    slab = slab.at[r1:r1 + H, 0:H].set(p["w_a1"])
    slab = slab.at[r1:r1 + H, hp:hp + H].set(p["w_c1"])
    # fused output weight, block-diagonal.
    r2 = sp + hp
    slab = slab.at[r2:r2 + H, 0:A].set(p["w_a2"])
    slab = slab.at[r2 + hp:r2 + hp + H, A:A + 1].set(p["w_c2"])
    slab = slab.astype(jnp.bfloat16)

    # Biases kept f32 (exact epilogue); zero in padded columns -> exact zeros
    # flow through the ReLUs for the padded lanes.
    bias = jnp.zeros((16, cols), jnp.float32)
    bias = bias.at[0, 0:H].set(p["b_head"][0])
    bias = bias.at[0, hp:hp + A].set(p["b_a2"][0])
    bias = bias.at[0, hp + A].set(p["b_c2"][0, 0])
    bias = bias.at[8, 0:H].set(p["b_a1"][0])
    bias = bias.at[8, hp:hp + H].set(p["b_c1"][0])

    return dict(slab=slab, bias=bias, state_space=S, action_space=A,
                hidden_size=H, hp=hp, sp=sp)


def reference_forward(x, p):
    h = jnp.maximum(x @ p["w_head"] + p["b_head"], 0.0)
    a = jnp.maximum(h @ p["w_a1"] + p["b_a1"], 0.0) @ p["w_a2"] + p["b_a2"]
    v = jnp.maximum(h @ p["w_c1"] + p["b_c1"], 0.0) @ p["w_c2"] + p["b_c2"]
    return a, v


if __name__ == "__main__":
    state_space = 16
    action_space = 4
    hidden_size = 32
    batch = 8

    key = jax.random.PRNGKey(0)
    k_x, k_p = jax.random.split(key)
    x = jax.random.normal(k_x, (batch, state_space), jnp.float32)
    params = init_params(k_p, state_space, action_space, hidden_size)
    packed = pack_params(params, state_space, action_space, hidden_size)

    action, value = actor_critic_forward(x, packed)
    action, value = jax.block_until_ready((action, value))

    ref_action, ref_value = reference_forward(x, params)
    assert action.shape == (batch, action_space)
    assert value.shape == (batch, 1)
    # bf16 MXU operands (f32 accumulate) -> relaxed tolerance vs f32 reference.
    assert jnp.allclose(action, ref_action, atol=5e-2, rtol=5e-2)
    assert jnp.allclose(value, ref_value, atol=5e-2, rtol=5e-2)

    print("KERNEL_OK")
</pallas_src>

<mosaic_0001>
module attributes {stable_mosaic.version = 11 : i64} {
  func.func @actor_critic_kernel(%arg0: i32, %arg1: memref<8x16xf32, #tpu.memory_space<vmem>>, %arg2: memref<400x256xbf16, #tpu.memory_space<vmem>>, %arg3: memref<16x256xf32, #tpu.memory_space<vmem>>, %arg4: memref<8x128xf32, #tpu.memory_space<vmem>>) attributes {dimension_semantics = [#tpu.dimension_semantics<parallel>], iteration_bounds = array<i64: 1>, scalar_prefetch = 0 : i64, scratch_operands = 0 : i64, tpu.core_type = #tpu.core_type<tc>, window_params = [{transform_indices = @transform_0, window_bounds = array<i64: 8, 16>}, {pipeline_mode = #tpu.pipeline_mode<synchronous>, transform_indices = @transform_1, window_bounds = array<i64: 400, 256>}, {pipeline_mode = #tpu.pipeline_mode<synchronous>, transform_indices = @transform_2, window_bounds = array<i64: 16, 256>}, {transform_indices = @transform_3, window_bounds = array<i64: 8, 128>}]} {
    %c0 = arith.constant 0 : index
    %c0_0 = arith.constant 0 : index
    %0 = vector.load %arg1[%c0, %c0_0] : memref<8x16xf32, #tpu.memory_space<vmem>>, vector<8x16xf32>
    %1 = arith.truncf %0 : vector<8x16xf32> to vector<8x16xbf16>
    %c0_1 = arith.constant 0 : index
    %c0_2 = arith.constant 0 : index
    %2 = vector.load %arg2[%c0_1, %c0_2] : memref<400x256xbf16, #tpu.memory_space<vmem>>, vector<16x128xbf16>
    %c16 = arith.constant 16 : index
    %c0_3 = arith.constant 0 : index
    %3 = vector.load %arg2[%c16, %c0_3] : memref<400x256xbf16, #tpu.memory_space<vmem>>, vector<128x256xbf16>
    %c144 = arith.constant 144 : index
    %c0_4 = arith.constant 0 : index
    %4 = vector.load %arg2[%c144, %c0_4] : memref<400x256xbf16, #tpu.memory_space<vmem>>, vector<256x128xbf16>
    %c0_5 = arith.constant 0 : index
    %c0_6 = arith.constant 0 : index
    %5 = vector.load %arg3[%c0_5, %c0_6] : memref<16x256xf32, #tpu.memory_space<vmem>>, vector<1x128xf32>
    %c0_7 = arith.constant 0 : index
    %c128 = arith.constant 128 : index
    %6 = vector.load %arg3[%c0_7, %c128] : memref<16x256xf32, #tpu.memory_space<vmem>>, vector<1x128xf32>
    %c8 = arith.constant 8 : index
    %c0_8 = arith.constant 0 : index
    %7 = vector.load %arg3[%c8, %c0_8] : memref<16x256xf32, #tpu.memory_space<vmem>>, vector<1x256xf32>
    %cst = arith.constant dense<0.000000e+00> : vector<8x128xf32>
    %8 = tpu.matmul %1, %2, %cst {dimension_numbers = #tpu.dot_dimension_numbers<[1], [0], [0], [1], [0, 0, 1, 1], [], []>} : vector<8x16xbf16>, vector<16x128xbf16>, vector<8x128xf32> -> vector<8x128xf32>
    %9 = vector.broadcast %5 : vector<1x128xf32> to vector<8x128xf32>
    %10 = arith.addf %8, %9 : vector<8x128xf32>
    %cst_9 = arith.constant 0.000000e+00 : f32
    %11 = vector.broadcast %cst_9 : f32 to vector<8x128xf32>
    %12 = arith.maximumf %10, %11 : vector<8x128xf32>
    %13 = arith.truncf %12 : vector<8x128xf32> to vector<8x128xbf16>
    %cst_10 = arith.constant dense<0.000000e+00> : vector<8x256xf32>
    %14 = tpu.matmul %13, %3, %cst_10 {dimension_numbers = #tpu.dot_dimension_numbers<[1], [0], [0], [1], [0, 0, 1, 1], [], []>} : vector<8x128xbf16>, vector<128x256xbf16>, vector<8x256xf32> -> vector<8x256xf32>
    %15 = vector.broadcast %7 : vector<1x256xf32> to vector<8x256xf32>
    %16 = arith.addf %14, %15 : vector<8x256xf32>
    %cst_11 = arith.constant 0.000000e+00 : f32
    %17 = vector.broadcast %cst_11 : f32 to vector<8x256xf32>
    %18 = arith.maximumf %16, %17 : vector<8x256xf32>
    %19 = arith.truncf %18 : vector<8x256xf32> to vector<8x256xbf16>
    %cst_12 = arith.constant dense<0.000000e+00> : vector<8x128xf32>
    %20 = tpu.matmul %19, %4, %cst_12 {dimension_numbers = #tpu.dot_dimension_numbers<[1], [0], [0], [1], [0, 0, 1, 1], [], []>} : vector<8x256xbf16>, vector<256x128xbf16>, vector<8x128xf32> -> vector<8x128xf32>
    %21 = vector.broadcast %6 : vector<1x128xf32> to vector<8x128xf32>
    %22 = arith.addf %20, %21 : vector<8x128xf32>
    %c0_13 = arith.constant 0 : index
    %c0_14 = arith.constant 0 : index
    %23 = vector.load %arg4[%c0_13, %c0_14] : memref<8x128xf32, #tpu.memory_space<vmem>>, vector<8x128xf32>
    tpu.vector_store %arg4[%c0_13, %c0_14], %22 {strides = array<i32>} : memref<8x128xf32, #tpu.memory_space<vmem>>, vector<8x128xf32>,
    return
  }
  func.func @transform_0(%arg0: i32) -> (i32, i32) {
    %c0_i32 = arith.constant 0 : i32
    %c0_i32_0 = arith.constant 0 : i32
    return %arg0, %c0_i32 : i32, i32
  }
  func.func @transform_1(%arg0: i32) -> (i32, i32) {
    %c0_i32 = arith.constant 0 : i32
    %c0_i32_0 = arith.constant 0 : i32
    %c0_i32_1 = arith.constant 0 : i32
    return %c0_i32, %c0_i32_0 : i32, i32
  }
  func.func @transform_2(%arg0: i32) -> (i32, i32) {
    %c0_i32 = arith.constant 0 : i32
    %c0_i32_0 = arith.constant 0 : i32
    %c0_i32_1 = arith.constant 0 : i32
    return %c0_i32, %c0_i32_0 : i32, i32
  }
  func.func @transform_3(%arg0: i32) -> (i32, i32) {
    %c0_i32 = arith.constant 0 : i32
    %c0_i32_0 = arith.constant 0 : i32
    return %arg0, %c0_i32 : i32, i32
  }
}

</mosaic_0001>

<bundles_post_ra>
// kernel: tpu_custom_call.1
= control target key start
LH: loop header
LB: loop body
LE: loop exit
PB: predicated region body
PF: predicated region fallthrough
CT: control target
= control target key end

     0   :  { %8 = vsyncpa [#allocation3], 0  ;;  %s741_s0 = inlined_call_operand.hbm [shape: f32[8,16], index: 0, kind: input, shape index: {}]   ;;  %s742_s1 = inlined_call_operand.hbm [shape: bf16[400,256], index: 1, kind: input, shape index: {}]   ;;  %s743_s2 = inlined_call_operand.hbm [shape: f32[16,256], index: 2, kind: input, shape index: {}]   ;;  %s744_s3 = inlined_call_operand.hbm [shape: f32[8,128], index: 3, kind: output, shape index: {}]  }
   0x1   :  { %9 = vsyncpa [#allocation6], 0 }
   0x2   :  { %10 = vsyncpa [#allocation4], 0  ;;  %s662_s12 = smov [#allocation5]   ;;  %s568_s16 = scalar_lea.hbm %s742_s1, 6400 }
   0x3   :  { %s26_s13 = sshll.u32 %s662_s12, 4  ;;  %p569_p0 = scmp.ne.s32.totalorder %s742_s1, %s568_s16  ;;  %s27_s13 = int_to_ptr.vmem [resolvable:$true] %s26_s13 }
   0x4   :  { %p572_p1 = scmp.lt.u32.totalorder %s568_s16, %s742_s1 }
   0x6   :  { %p574_p2 = pnand %p572_p1, %p569_p0 }
   0x8   :  { %577 = shalt.err (!%p574_p2)
}
   0x9   :  { %s578_s21 = scalar_lea.vmem %s27_s13, 6400  ;;  %p583_p4 = scmp.lt.s32.totalorder %s27_s13, %s27_s13 }
   0xa   :  { %p579_p3 = scmp.ne.s32.totalorder %s27_s13, %s578_s21  ;;  %p584_p5 = scmp.lt.s32.totalorder %s578_s21, %s578_s21 }
   0xc   :  { %p585_p6 = por %p584_p5, %p583_p4 }
   0xe   :  { %p586_p7 = pnand %p585_p6, %p579_p3 }
  0x10   :  { %589 = shalt.err (!%p586_p7)
}
  0x11   :  { %s663_s22 = smov 128   ;;  %s664_s23 = smov 8  }
  0x12   :  { %32 = dma.hbm_to_vmem [thread:$0]  %s742_s1, 6400, %s27_s13, [#allocation6], %s663_s22, %s663_s22, %s664_s23  }
  0x13   :  { %s665_s26 = smov [#allocation2]   ;;  %s666_s28 = smov [#allocation7]  }
  0x14   :  { %s17_s27 = sshll.u32 %s665_s26, 4  ;;  %s38_s29 = sshll.u32 %s666_s28, 4  ;;  %s18_s27 = int_to_ptr.vmem [resolvable:$true] %s17_s27  ;;  %s39_s29 = int_to_ptr.vmem [resolvable:$true] %s38_s29 }
  0x15   :  { %s590_s5 = scalar_lea.hbm %s741_s0, 128 }
  0x16   :  { %p591_p8 = scmp.ne.s32.totalorder %s741_s0, %s590_s5  ;;  %p594_p9 = scmp.lt.u32.totalorder %s590_s5, %s741_s0 }
  0x18   :  { %p596_p10 = pnand %p594_p9, %p591_p8 }
  0x1a   :  { %599 = shalt.err (!%p596_p10)
}
  0x1b   :  { %s600_s1 = scalar_lea.vmem %s18_s27, 128  ;;  %p605_p12 = scmp.lt.s32.totalorder %s18_s27, %s18_s27 }
  0x1c   :  { %p601_p11 = scmp.ne.s32.totalorder %s18_s27, %s600_s1  ;;  %p606_p13 = scmp.lt.s32.totalorder %s600_s1, %s600_s1 }
  0x1e   :  { %p607_p0 = por %p606_p13, %p605_p12 }
  0x20   :  { %p608_p1 = pnand %p607_p0, %p601_p11 }
  0x22   :  { %611 = shalt.err (!%p608_p1)
}
  0x23   :  { %20 = dma.hbm_to_vmem [thread:$0]  %s741_s0, 128, %s18_s27, [#allocation3]  }
  0x24   :  { %s612_s14 = scalar_lea.hbm %s743_s2, 512 }
  0x25   :  { %p613_p2 = scmp.ne.s32.totalorder %s743_s2, %s612_s14  ;;  %p616_p3 = scmp.lt.u32.totalorder %s612_s14, %s743_s2 }
  0x27   :  { %p618_p4 = pnand %p616_p3, %p613_p2 }
  0x29   :  { %621 = shalt.err (!%p618_p4)
}
  0x2a   :  { %s622_s19 = scalar_lea.vmem %s39_s29, 512  ;;  %p627_p6 = scmp.lt.s32.totalorder %s39_s29, %s39_s29 }
  0x2b   :  { %p623_p5 = scmp.ne.s32.totalorder %s39_s29, %s622_s19  ;;  %p628_p7 = scmp.lt.s32.totalorder %s622_s19, %s622_s19 }
  0x2d   :  { %p629_p8 = por %p628_p7, %p627_p6 }
  0x2f   :  { %p630_p9 = pnand %p629_p8, %p623_p5 }
  0x31   :  { %633 = shalt.err (!%p630_p9)
}
  0x32   :  { %s667_s0 = smov 256   ;;  %s668_s20 = smov 16  }
  0x33   :  { %44 = dma.hbm_to_vmem [thread:$0]  %s743_s2, 512, %s39_s29, [#allocation6], %s667_s0, %s667_s0, %s668_s20  }
  0x34   :  { %656 = dma.done.wait [#allocation3], 128  }
  0x35   :  { %657 = vsyncadd [#allocation3], 4294967168 }
  0x36   :  { %658 = dma.done.wait [#allocation6], 6912  }
  0x37   :  { %659 = vsyncadd [#allocation6], 4294960384  ;;  %v669_v0 = vmov 0.0   ;;  %vm670_vm0 = vmmov 0   ;;  %v527_v1 = vld [vmem:[#allocation5] ss:$8 sps:$4 sm:$0xff]   ;;  %v164_v45 = vlaneseq }
  0x38   :  { %510 = vmatprep.subr.bf16.mxu0 %v669_v0  ;;  %512 = vmatprep.mubr.msk.bf16.mxu0 %vm670_vm0, %v669_v0  ;;  %v55_v2 = vld [vmem:[#allocation2] sm:$0xff]  ;;  %vm117_vm1 = vcmask 130048   ;;  %v531_v6 = vld [vmem:[#allocation5 + $0x24] ss:$8 sps:$4 sm:$0xff]   ;;  %v533_v7 = vld [vmem:[#allocation5 + $0x20] ss:$8 sps:$4 sm:$0xff]  }
  0x39   :  { %511 = vmatpush3.bf16.msra.mxu0 %v527_v1  ;;  %v56_v3 = vpack.c.bf16 %v55_v2, %v55_v2  ;;  %v528_v4 = vld [vmem:[#allocation5 + $0x14] ss:$8 sps:$4 sm:$0xff]   ;;  %v530_v5 = vld [vmem:[#allocation5 + $0x10] ss:$8 sps:$4 sm:$0xff]   ;;  %v537_v10 = vld [vmem:[#allocation5 + $0x44] ss:$8 sps:$4 sm:$0xff]  }
  0x3a   :  { %254 = vmatprep.subr.bf16.mxu1 %v528_v4  ;;  %v534_v8 = vld [vmem:[#allocation5 + $0x34] ss:$8 sps:$4 sm:$0xff]   ;;  %v536_v9 = vld [vmem:[#allocation5 + $0x30] ss:$8 sps:$4 sm:$0xff]   ;;  %v539_v11 = vld [vmem:[#allocation5 + $0x40] ss:$8 sps:$4 sm:$0xff]  }
  0x3b   :  { %255 = vmatpush1.bf16.msra.mxu1 %v530_v5  ;;  %v540_v12 = vld [vmem:[#allocation5 + $0x54] ss:$8 sps:$4 sm:$0xff]   ;;  %v542_v13 = vld [vmem:[#allocation5 + $0x50] ss:$8 sps:$4 sm:$0xff]   ;;  %v543_v14 = vld [vmem:[#allocation5 + $0x64] ss:$8 sps:$4 sm:$0xff]  }
  0x3c   :  { %513 = vmatmul.mubr.msk.bf16.vlgmr.msra.gmra.mrb[0].mxu0 %vm117_vm1, %v56_v3  ;;  %256 = vmatprep.subr.bf16.mxu1 %v531_v6  ;;  %v545_v15 = vld [vmem:[#allocation5 + $0x60] ss:$8 sps:$4 sm:$0xff]   ;;  %v546_v16 = vld [vmem:[#allocation5 + $0x74] ss:$8 sps:$4 sm:$0xff]   ;;  %v548_v17 = vld [vmem:[#allocation5 + $0x70] ss:$8 sps:$4 sm:$0xff]  }
  0x3d   :  { %v549_v18 = vld [vmem:[#allocation5 + $0x84] ss:$8 sps:$4 sm:$0xff]   ;;  %v551_v19 = vld [vmem:[#allocation5 + $0x80] ss:$8 sps:$4 sm:$0xff]   ;;  %v671_v20 = vmov 0   ;;  %v165_v46 = vshrl.u32 %v164_v45, 7 }
  0x3e   :  { %286 = vmatprep.mubr.bf16.mxu1 %v671_v20  ;;  %v552_v21 = vld [vmem:[#allocation5 + $0x110] ss:$8 sps:$4 sm:$0xff]   ;;  %v554_v23 = vld [vmem:[#allocation5 + $0x120] ss:$8 sps:$4 sm:$0xff]   ;;  %s672_s2 = smov [#allocation8]  }
  0x3f   :  { %257 = vmatpush1.bf16.msra.mxu1 %v533_v7  ;;  %v553_v22 = vld [vmem:[#allocation5 + $0x90] ss:$8 sps:$4 sm:$0xff]   ;;  %488 = vmatprep.subr.bf16.mxu0 %v552_v21  ;;  %v555_v24 = vld [vmem:[#allocation5 + $0xa0] ss:$8 sps:$4 sm:$0xff]   ;;  %v166_v47 = vsub.s32 0, %v165_v46  ;;  %v170_v49 = vsub.s32 1, %v165_v46 }
  0x40   :  { %258 = vmatprep.subr.bf16.mxu1 %v534_v8  ;;  %489 = vmatpush3.bf16.msra.mxu0 %v553_v22  ;;  %v556_v25 = vld [vmem:[#allocation5 + $0x130] ss:$8 sps:$4 sm:$0xff]   ;;  %v558_v27 = vld [vmem:[#allocation5 + $0x140] ss:$8 sps:$4 sm:$0xff]   ;;  %s442_s23 = sshll.u32 %s672_s2, 4  ;;  %s443_s23 = int_to_ptr.vmem [resolvable:$true] %s442_s23 }
  0x41   :  { %490 = vmatprep.subr.bf16.mxu0 %v554_v23  ;;  %v557_v26 = vld [vmem:[#allocation5 + $0xb0] ss:$8 sps:$4 sm:$0xff]   ;;  %v559_v28 = vld [vmem:[#allocation5 + $0xc0] ss:$8 sps:$4 sm:$0xff]   ;;  %s634_s24 = scalar_lea.vmem %s443_s23, 128  ;;  %p639_p11 = scmp.lt.s32.totalorder %s443_s23, %s443_s23 }
  0x42   :  { %v560_v29 = vld [vmem:[#allocation5 + $0x150] ss:$8 sps:$4 sm:$0xff]   ;;  %v562_v31 = vld [vmem:[#allocation5 + $0x160] ss:$8 sps:$4 sm:$0xff]   ;;  %p635_p10 = scmp.ne.s32.totalorder %s443_s23, %s634_s24  ;;  %p640_p12 = scmp.lt.s32.totalorder %s634_s24, %s634_s24 }
  0x43   :  { %259 = vmatpush1.bf16.msra.mxu1 %v536_v9  ;;  %v561_v30 = vld [vmem:[#allocation5 + $0xd0] ss:$8 sps:$4 sm:$0xff]   ;;  %v563_v32 = vld [vmem:[#allocation5 + $0xe0] ss:$8 sps:$4 sm:$0xff]  }
  0x44   :  { %260 = vmatprep.subr.bf16.mxu1 %v537_v10  ;;  %491 = vmatpush3.bf16.msra.mxu0 %v555_v24  ;;  %v107_v33 = vld [vmem:[#allocation7] ss:$0 sm:$0xff]  ;;  %v566_v43 = vld [vmem:[#allocation5 + $0x180] ss:$8 sps:$4 sm:$0xff]   ;;  %v108_v63 = vld [vmem:[#allocation7 + $0x8] ss:$0 sm:$0xff]  ;;  %p641_p13 = por %p640_p12, %p639_p11 }
  0x45   :  { %492 = vmatprep.subr.bf16.mxu0 %v556_v25  ;;  %v564_v41 = vld [vmem:[#allocation5 + $0x170] ss:$8 sps:$4 sm:$0xff]   ;;  %v567_v44 = vld [vmem:[#allocation5 + $0x100] ss:$8 sps:$4 sm:$0xff]  }
  0x46   :  { %v565_v42 = vld [vmem:[#allocation5 + $0xf0] ss:$8 sps:$4 sm:$0xff]   ;;  %v110_v48 = vld [vmem:[#allocation7 + $0x10] ss:$8 sm:$0x3]  ;;  %p642_p0 = pnand %p641_p13, %p635_p10 }
  0x47   :  { %261 = vmatpush1.bf16.msra.mxu1 %v539_v11  ;;  %v167_v50 = vrot.slane %v110_v48, %v166_v47  ;;  %v171_v51 = vrot.slane %v110_v48, %v170_v49 }
  0x48   :  { %262 = vmatprep.subr.bf16.mxu1 %v540_v12  ;;  %493 = vmatpush3.bf16.msra.mxu0 %v557_v26 }
  0x49   :  { %494 = vmatprep.subr.bf16.mxu0 %v558_v27 }
  0x4b   :  { %263 = vmatpush1.bf16.msra.mxu1 %v542_v13 }
  0x4c   :  { %264 = vmatprep.subr.bf16.mxu1 %v543_v14  ;;  %495 = vmatpush3.bf16.msra.mxu0 %v559_v28 }
  0x4d   :  { %496 = vmatprep.subr.bf16.mxu0 %v560_v29 }
  0x4f   :  { %265 = vmatpush1.bf16.msra.mxu1 %v545_v15 }
  0x50   :  { %266 = vmatprep.subr.bf16.mxu1 %v546_v16  ;;  %497 = vmatpush3.bf16.msra.mxu0 %v561_v30 }
  0x51   :  { %498 = vmatprep.subr.bf16.mxu0 %v562_v31 }
  0x53   :  { %267 = vmatpush1.bf16.msra.mxu1 %v548_v17 }
  0x54   :  { %268 = vmatprep.subr.bf16.mxu1 %v549_v18  ;;  %499 = vmatpush3.bf16.msra.mxu0 %v563_v32 }
  0x55   :  { %500 = vmatprep.subr.bf16.mxu0 %v564_v41 }
  0x57   :  { %269 = vmatpush1.bf16.msra.mxu1 %v551_v19 }
  0x58   :  { %501 = vmatpush3.bf16.msra.mxu0 %v565_v42 }
  0x59   :  { %502 = vmatprep.subr.bf16.mxu0 %v566_v43 }
  0x5c   :  { %503 = vmatpush3.bf16.msra.mxu0 %v567_v44 }
 0x10f   :  { %v155_v34 = vpop.f32.mrb[0].mxu0 }
 0x110   :  { %v156_v35 = vadd.f32 %v155_v34, %v107_v33  ;;  %v514_v36 = vpop.f32.mrb[1].mxu0 }
 0x111   :  { %v158_v37 = vpop.f32.mrb[2].mxu0 }
 0x112   :  { %v161_v38 = vmax.f32 %v156_v35, 0.0  ;;  %v515_v39 = vpop.f32.mrb[3].mxu0 }
 0x114   :  { %v162_v40 = vpack.c.bf16 %v161_v38, %v161_v38 }
 0x116   :  { %287 = vmatmul.mubr.bf16.vlgmr.msra.gmra.mrb[0].mxu1 %v162_v40 }
 0x1e9   :  { %v288_v52 = vpop.f32.mrb[0].mxu1 }
 0x1ea   :  { %v289_v53 = vadd.f32 %v288_v52, %v167_v50  ;;  %v290_v54 = vpop.f32.mrb[1].mxu1 }
 0x1eb   :  { %v291_v55 = vadd.f32 %v290_v54, %v171_v51  ;;  %v292_v56 = vpop.f32.mrb[2].mxu1 }
 0x1ec   :  { %v295_v57 = vmax.f32 %v289_v53, 0.0  ;;  %v293_v58 = vpop.f32.mrb[3].mxu1 }
 0x1ed   :  { %v296_v59 = vmax.f32 %v291_v55, 0.0 }
 0x1ee   :  { %v297_v61 = vpack.c.bf16 %v295_v57, %v295_v57 }
 0x1ef   :  { %v298_v60 = vpack.c.bf16 %v296_v59, %v296_v59 }
 0x1f1   :  { %427 = vmatprep.mubr.bf16.mxu0 %v298_v60 }
 0x1f2   :  { %428 = vmatmul.mubr.bf16.vlgmr.msra.gmra.mrb[4].mxu0 %v297_v61 }
 0x2c5   :  { %v504_v62 = vpop.f32.mrb[4].mxu0 }
 0x2c6   :  { %v505_v0 = vpop.f32.mrb[5].mxu0 }
 0x2c7   :  { %v506_v1 = vadd.f32 %v505_v0, %v504_v62  ;;  %v507_v2 = vpop.f32.mrb[6].mxu0 }
 0x2c8   :  { %v508_v3 = vpop.f32.mrb[7].mxu0 }
 0x2c9   :  { %v430_v4 = vadd.f32 %v506_v1, %v108_v63 }
 0x2cb   :  { %435 = vst [vmem:[#allocation8] sm:$0xff] %v430_v4 }
 0x2cc   :  { %645 = shalt.err (!%p642_p0)
}
 0x2cd   :  { %s646_s27 = scalar_lea.hbm %s744_s3, 128 }
 0x2ce   :  { %p647_p1 = scmp.ne.s32.totalorder %s744_s3, %s646_s27  ;;  %p650_p2 = scmp.lt.u32.totalorder %s646_s27, %s744_s3 }
 0x2d0   :  { %p652_p3 = pnand %p650_p2, %p647_p1 }
 0x2d2   :  { %655 = shalt.err (!%p652_p3)
}
 0x2d3   :  { %445 = dma.vmem_to_hbm [thread:$0]  %s443_s23, 128, %s744_s3, [#allocation4]  }
 0x2d4   :  { %660 = dma.done.wait [#allocation4], 128  }
 0x2d5   :  { %661 = vsyncadd [#allocation4], 4294967168 }
 0x2d6   :  { %449 = vsyncpa [#allocation3], 1 }
 0x2d7   :  { %450 = vsyncpa [#allocation6], 1 }
 0x2d8   :  { %451 = vsyncpa [#allocation4], 1 }

</bundles_post_ra>
